<compile_context>
chip_gen: v6e
topology: v6e:2x2x1
jax: 0.10.0
libtpu: 0.0.40
codegen_flags: <defaults>
</compile_context>

<pallas_src>
import functools

import jax
import jax.numpy as jnp
from jax.experimental import pallas as pl
from jax.experimental.pallas import tpu as pltpu


def _temporal_conv_kernel(x_ref, wp_ref, wq_ref, bp_ref, bq_ref, o_ref):
    # x_ref : (C_in*Tp, tm)        padded input columns, lane-dense along M
    # wp_ref: (out_c*T_out, C_in*Tp)  block-Toeplitz conv weight, P half (resident)
    # wq_ref: (out_c*T_out, C_in*Tp)  block-Toeplitz conv weight, Q half (resident)
    # bp_ref: (out_c*T_out, 1)     bias, P half (resident)
    # bq_ref: (out_c*T_out, 1)     bias, Q half (resident)
    # o_ref : (out_c*T_out, tm)    gated output, lane-dense along M
    x = x_ref[...]
    p = jnp.dot(wp_ref[...], x, preferred_element_type=jnp.float32) + bp_ref[...]
    q = jnp.dot(wq_ref[...], x, preferred_element_type=jnp.float32) + bq_ref[...]
    o_ref[...] = (p * jax.nn.sigmoid(q)).astype(o_ref.dtype)


@functools.partial(jax.jit, static_argnames=("out_c", "k", "tm"))
def temporal_conv(x, w, b, *, out_c, k, tm=8192):
    """x: (B, C_in, N, T) NCHW, w: (2*out_c, C_in, 1, k), b: (2*out_c,)."""
    B, c_in, N, T = x.shape
    pad = k // 2
    Tp = T + 2 * pad
    T_out = T + 2 * pad - k + 1          # == T for odd k, T+1 for even k (PyTorch)
    M = B * N
    cin_tp = c_in * Tp
    out_rows = out_c * T_out

    # ---- layout plumbing (single pass, no k-fold duplication) --------------
    # (B, C_in, N, T) -> (C_in, T, B, N) -> pad time -> (C_in*Tp, M)
    xr = jnp.transpose(x, (1, 3, 0, 2))                            # (Cin, T, B, N)
    xp = jnp.pad(xr, ((0, 0), (pad, pad), (0, 0), (0, 0)))         # (Cin, Tp, B, N)
    xcols = xp.reshape(cin_tp, M)                                  # (Cin*Tp, M)

    # ---- fold the k temporal taps into a small block-Toeplitz weight -------
    # h[o, t, m] = sum_{ci,j} w[o,ci,0,j] * xp[ci, t+j, m]
    # => Wbig[o*T_out + t, ci*Tp + tp] = w[o, ci, 0, tp - t]  (0 <= tp-t < k)
    wk = w[:, :, 0, :].astype(jnp.float32)                         # (2oc, Cin, k)
    t_idx = jnp.arange(T_out)[:, None]
    tp_idx = jnp.arange(Tp)[None, :]
    j = tp_idx - t_idx                                             # (T_out, Tp)
    valid = (j >= 0) & (j < k)
    jc = jnp.clip(j, 0, k - 1)
    wg = jnp.where(valid[None, None], wk[:, :, jc], 0.0)           # (2oc, Cin, T_out, Tp)
    wbig = jnp.transpose(wg, (0, 2, 1, 3)).reshape(2 * out_c * T_out, cin_tp)
    wp = wbig[:out_rows]
    wq = wbig[out_rows:]
    bexp = jnp.repeat(b.astype(jnp.float32), T_out).reshape(2 * out_c * T_out, 1)
    bp = bexp[:out_rows]
    bq = bexp[out_rows:]

    # ---- lane tiling over M (multiple of 128) -------------------------------
    m_pad128 = pl.cdiv(M, 128) * 128
    tm = max(128, (tm // 128) * 128)
    tm = min(tm, m_pad128)
    # VMEM budget: double-buffered f32 input + output + live p/q intermediates,
    # sized for v7x (64 MiB physical / 32 MiB default scoped VMEM).
    vmem_budget = 24 * 1024 * 1024
    bytes_per_col = 4 * (2 * cin_tp + 4 * out_rows)
    tm_cap = max(128, (vmem_budget // bytes_per_col) // 128 * 128)
    tm = min(tm, tm_cap)
    # Keep >= 2 grid steps when possible so the "parallel" axis can shard over
    # v7x's two TensorCores (costs one ~0.35 us step on single-TC v5e/v6e).
    if m_pad128 >= 2 * 128:
        tm = min(tm, pl.cdiv(pl.cdiv(m_pad128, 2), 128) * 128)
    grid = pl.cdiv(M, tm)
    Mp = grid * tm
    if Mp != M:
        xcols = jnp.pad(xcols, ((0, 0), (0, Mp - M)))

    out = pl.pallas_call(
        _temporal_conv_kernel,
        out_shape=jax.ShapeDtypeStruct((out_rows, Mp), x.dtype),
        grid_spec=pltpu.PrefetchScalarGridSpec(
            num_scalar_prefetch=0,
            grid=(grid,),
            in_specs=[
                pl.BlockSpec((cin_tp, tm), lambda i: (0, i)),        # streamed input
                pl.BlockSpec((out_rows, cin_tp), lambda i: (0, 0)),  # resident Wp
                pl.BlockSpec((out_rows, cin_tp), lambda i: (0, 0)),  # resident Wq
                pl.BlockSpec((out_rows, 1), lambda i: (0, 0)),       # resident bp
                pl.BlockSpec((out_rows, 1), lambda i: (0, 0)),       # resident bq
            ],
            out_specs=pl.BlockSpec((out_rows, tm), lambda i: (0, i)),
        ),
        compiler_params=pltpu.CompilerParams(
            dimension_semantics=("parallel",),
            vmem_limit_bytes=32 * 1024 * 1024),
    )(xcols, wp, wq, bp, bq)

    # (out_c*T_out, M) -> (out_c, T_out, B, N) -> (B, out_c, N, T_out)
    y = out[:, :M].reshape(out_c, T_out, B, N)
    return jnp.transpose(y, (2, 0, 3, 1))


def _reference(x, w, b, out_c, k):
    """Pure-JAX reference of the PyTorch forward (for sanity check)."""
    pad = k // 2
    h = jax.lax.conv_general_dilated(
        x, w, window_strides=(1, 1), padding=((0, 0), (pad, pad)),
        dimension_numbers=("NCHW", "OIHW", "NCHW"))
    h = h + b.reshape(1, -1, 1, 1)
    P = h[:, :out_c]
    Q = h[:, out_c:]
    return P * jax.nn.sigmoid(Q)


if __name__ == "__main__":
    # Module config: in_c=4, out_c=8, k=3.  Input NCHW: (B, in_c, N_nodes, T).
    B, in_c, out_c, k = 2, 4, 8, 3
    N, T = 16, 8

    key = jax.random.PRNGKey(0)
    kx, kw, kb = jax.random.split(key, 3)

    x = jax.random.normal(kx, (B, in_c, N, T), dtype=jnp.float32)
    # deterministic parameter init (Conv2d weight: (2*out_c, in_c, 1, k))
    w = jax.random.normal(kw, (2 * out_c, in_c, 1, k), dtype=jnp.float32) * 0.1
    b = jax.random.normal(kb, (2 * out_c,), dtype=jnp.float32) * 0.1

    y = temporal_conv(x, w, b, out_c=out_c, k=k)
    y = jax.block_until_ready(y)

    y_ref = _reference(x, w, b, out_c, k)
    assert y.shape == (B, out_c, N, T), y.shape
    err = float(jnp.max(jnp.abs(y - y_ref)))
    assert jnp.allclose(y, y_ref, atol=1e-4, rtol=1e-4), err

    print("KERNEL_OK")
</pallas_src>

<mosaic_0001>
module attributes {stable_mosaic.version = 11 : i64} {
  func.func @_temporal_conv_kernel(%arg0: i32, %arg1: memref<40x128xf32, #tpu.memory_space<vmem>>, %arg2: memref<64x40xf32, #tpu.memory_space<vmem>>, %arg3: memref<64x40xf32, #tpu.memory_space<vmem>>, %arg4: memref<64x1xf32, #tpu.memory_space<vmem>>, %arg5: memref<64x1xf32, #tpu.memory_space<vmem>>, %arg6: memref<64x128xf32, #tpu.memory_space<vmem>>) attributes {dimension_semantics = [#tpu.dimension_semantics<parallel>], iteration_bounds = array<i64: 1>, scalar_prefetch = 0 : i64, scratch_operands = 0 : i64, tpu.core_type = #tpu.core_type<tc>, window_params = [{transform_indices = @transform_0, window_bounds = array<i64: 40, 128>}, {pipeline_mode = #tpu.pipeline_mode<synchronous>, transform_indices = @transform_1, window_bounds = array<i64: 64, 40>}, {pipeline_mode = #tpu.pipeline_mode<synchronous>, transform_indices = @transform_2, window_bounds = array<i64: 64, 40>}, {pipeline_mode = #tpu.pipeline_mode<synchronous>, transform_indices = @transform_3, window_bounds = array<i64: 64, 1>}, {pipeline_mode = #tpu.pipeline_mode<synchronous>, transform_indices = @transform_4, window_bounds = array<i64: 64, 1>}, {transform_indices = @transform_5, window_bounds = array<i64: 64, 128>}]} {
    %c0 = arith.constant 0 : index
    %c0_0 = arith.constant 0 : index
    %0 = vector.load %arg1[%c0, %c0_0] : memref<40x128xf32, #tpu.memory_space<vmem>>, vector<40x128xf32>
    %c0_1 = arith.constant 0 : index
    %c0_2 = arith.constant 0 : index
    %1 = vector.load %arg2[%c0_1, %c0_2] : memref<64x40xf32, #tpu.memory_space<vmem>>, vector<64x40xf32>
    %cst = arith.constant dense<0.000000e+00> : vector<64x128xf32>
    %2 = tpu.matmul %1, %0, %cst {dimension_numbers = #tpu.dot_dimension_numbers<[1], [0], [0], [1], [0, 0, 1, 1], [], []>} : vector<64x40xf32>, vector<40x128xf32>, vector<64x128xf32> -> vector<64x128xf32>
    %c0_3 = arith.constant 0 : index
    %c0_4 = arith.constant 0 : index
    %3 = vector.load %arg4[%c0_3, %c0_4] : memref<64x1xf32, #tpu.memory_space<vmem>>, vector<64x1xf32>
    %4 = vector.broadcast %3 : vector<64x1xf32> to vector<64x128xf32>
    %5 = arith.addf %2, %4 : vector<64x128xf32>
    %c0_5 = arith.constant 0 : index
    %c0_6 = arith.constant 0 : index
    %6 = vector.load %arg3[%c0_5, %c0_6] : memref<64x40xf32, #tpu.memory_space<vmem>>, vector<64x40xf32>
    %cst_7 = arith.constant dense<0.000000e+00> : vector<64x128xf32>
    %7 = tpu.matmul %6, %0, %cst_7 {dimension_numbers = #tpu.dot_dimension_numbers<[1], [0], [0], [1], [0, 0, 1, 1], [], []>} : vector<64x40xf32>, vector<40x128xf32>, vector<64x128xf32> -> vector<64x128xf32>
    %c0_8 = arith.constant 0 : index
    %c0_9 = arith.constant 0 : index
    %8 = vector.load %arg5[%c0_8, %c0_9] : memref<64x1xf32, #tpu.memory_space<vmem>>, vector<64x1xf32>
    %9 = vector.broadcast %8 : vector<64x1xf32> to vector<64x128xf32>
    %10 = arith.addf %7, %9 : vector<64x128xf32>
    %11 = arith.negf %10 : vector<64x128xf32>
    %12 = math.exp %11 : vector<64x128xf32>
    %cst_10 = arith.constant 1.000000e+00 : f32
    %13 = vector.broadcast %cst_10 : f32 to vector<64x128xf32>
    %14 = arith.addf %13, %12 : vector<64x128xf32>
    %15 = arith.divf %13, %14 : vector<64x128xf32>
    %16 = arith.mulf %5, %15 : vector<64x128xf32>
    %c0_11 = arith.constant 0 : index
    %c0_12 = arith.constant 0 : index
    %17 = vector.load %arg6[%c0_11, %c0_12] : memref<64x128xf32, #tpu.memory_space<vmem>>, vector<64x128xf32>
    tpu.vector_store %arg6[%c0_11, %c0_12], %16 {strides = array<i32>} : memref<64x128xf32, #tpu.memory_space<vmem>>, vector<64x128xf32>,
    return
  }
  func.func @transform_0(%arg0: i32) -> (i32, i32) {
    %c0_i32 = arith.constant 0 : i32
    %c0_i32_0 = arith.constant 0 : i32
    return %c0_i32, %arg0 : i32, i32
  }
  func.func @transform_1(%arg0: i32) -> (i32, i32) {
    %c0_i32 = arith.constant 0 : i32
    %c0_i32_0 = arith.constant 0 : i32
    %c0_i32_1 = arith.constant 0 : i32
    return %c0_i32, %c0_i32_0 : i32, i32
  }
  func.func @transform_2(%arg0: i32) -> (i32, i32) {
    %c0_i32 = arith.constant 0 : i32
    %c0_i32_0 = arith.constant 0 : i32
    %c0_i32_1 = arith.constant 0 : i32
    return %c0_i32, %c0_i32_0 : i32, i32
  }
  func.func @transform_3(%arg0: i32) -> (i32, i32) {
    %c0_i32 = arith.constant 0 : i32
    %c0_i32_0 = arith.constant 0 : i32
    %c0_i32_1 = arith.constant 0 : i32
    return %c0_i32, %c0_i32_0 : i32, i32
  }
  func.func @transform_4(%arg0: i32) -> (i32, i32) {
    %c0_i32 = arith.constant 0 : i32
    %c0_i32_0 = arith.constant 0 : i32
    %c0_i32_1 = arith.constant 0 : i32
    return %c0_i32, %c0_i32_0 : i32, i32
  }
  func.func @transform_5(%arg0: i32) -> (i32, i32) {
    %c0_i32 = arith.constant 0 : i32
    %c0_i32_0 = arith.constant 0 : i32
    return %c0_i32, %arg0 : i32, i32
  }
}

</mosaic_0001>

<bundles_post_ra>
// kernel: temporal_conv.1
= control target key start
LH: loop header
LB: loop body
LE: loop exit
PB: predicated region body
PF: predicated region fallthrough
CT: control target
= control target key end

     0   :  { %v593_v2 = vmov 0   ;;  %vm81_vm0 = vcmask 326656   ;;  %s775_s0 = inlined_call_operand.vmem [shape: f32[40,128], index: 0, kind: input, shape index: {}]   ;;  %s776_s1 = inlined_call_operand.vmem [shape: f32[64,40], index: 1, kind: input, shape index: {}]   ;;  %s777_s2 = inlined_call_operand.vmem [shape: f32[64,40], index: 2, kind: input, shape index: {}]   ;;  %s778_s4 = inlined_call_operand.vmem [shape: f32[64,1], index: 4, kind: input, shape index: {}]   ;;  %s779_s3 = inlined_call_operand.vmem [shape: f32[64,1], index: 3, kind: input, shape index: {}]   ;;  %s780_s5 = inlined_call_operand.vmem [shape: f32[64,128], index: 5, kind: output, shape index: {}]  }
   0x1   :  { %v24_v0 = vld [vmem:[%s775_s0 + $0x20] sm:$0xff]  ;;  %v23_v1 = vld [vmem:[%s775_s0 + $0x18] sm:$0xff]  ;;  %560 = vset.pattern.permute.xlu1 %v593_v2  ;;  %559 = vset.pattern.permute.xlu0 %v593_v2  ;;  %v22_v3 = vld [vmem:[%s775_s0 + $0x10] sm:$0xff] }
   0x2   :  { %514 = vmatprep.subr.mxu0 %v24_v0  ;;  %536 = vmatprep.subr.mxu1 %v24_v0  ;;  %v21_v4 = vld [vmem:[%s775_s0 + $0x8] sm:$0xff]  ;;  %v20_v5 = vld [vmem:[%s775_s0] sm:$0xff]  ;;  %v27_v10 = vld [vmem:[%s776_s1 + $0x10] sm:$0xff] }
   0x3   :  { %515 = vmatpush3.msra.mxu0 %v24_v0  ;;  %537 = vmatpush3.msra.mxu1 %v24_v0  ;;  %v25_v6 = vld [vmem:[%s776_s1] sm:$0xff]  ;;  %v26_v8 = vld [vmem:[%s776_s1 + $0x8] sm:$0xff]  ;;  %v213_v11 = vld [vmem:[%s777_s2 + $0x10] sm:$0xff] }
   0x4   :  { %516 = vmatprep.subr.mxu0 %v23_v1  ;;  %538 = vmatprep.subr.mxu1 %v23_v1  ;;  %v211_v7 = vld [vmem:[%s777_s2] sm:$0xff]  ;;  %v212_v9 = vld [vmem:[%s777_s2 + $0x8] sm:$0xff]  ;;  %v221_v12 = vld [vmem:[%s778_s4 + $0x10] sm:$0xff] }
   0x5   :  { %517 = vmatpush3.msra.mxu0 %v23_v1  ;;  %539 = vmatpush3.msra.mxu1 %v23_v1  ;;  %v219_v13 = vld [vmem:[%s778_s4] sm:$0xff]  ;;  %v28_v14 = vld [vmem:[%s776_s1 + $0x18] sm:$0xff]  ;;  %v220_v19 = vld [vmem:[%s778_s4 + $0x8] sm:$0xff] }
   0x6   :  { %518 = vmatprep.subr.mxu0 %v22_v3  ;;  %540 = vmatprep.subr.mxu1 %v22_v3  ;;  %v214_v15 = vld [vmem:[%s777_s2 + $0x18] sm:$0xff]  ;;  %v29_v16 = vld [vmem:[%s776_s1 + $0x20] sm:$0xff]  ;;  %v30_v20 = vld [vmem:[%s776_s1 + $0x28] sm:$0xff] }
   0x7   :  { %519 = vmatpush3.msra.mxu0 %v22_v3  ;;  %541 = vmatpush3.msra.mxu1 %v22_v3  ;;  %v215_v17 = vld [vmem:[%s777_s2 + $0x20] sm:$0xff]  ;;  %v222_v18 = vld [vmem:[%s778_s4 + $0x18] sm:$0xff]  ;;  %v216_v21 = vld [vmem:[%s777_s2 + $0x28] sm:$0xff] }
   0x8   :  { %520 = vmatprep.subr.mxu0 %v21_v4  ;;  %542 = vmatprep.subr.mxu1 %v21_v4  ;;  %v31_v22 = vld [vmem:[%s776_s1 + $0x30] sm:$0xff]  ;;  %v224_v24 = vld [vmem:[%s778_s4 + $0x28] sm:$0xff]  ;;  %v223_v25 = vld [vmem:[%s778_s4 + $0x20] sm:$0xff] }
   0x9   :  { %521 = vmatpush3.msra.mxu0 %v21_v4  ;;  %543 = vmatpush3.msra.mxu1 %v21_v4  ;;  %v217_v23 = vld [vmem:[%s777_s2 + $0x30] sm:$0xff]  ;;  %v32_v26 = vld [vmem:[%s776_s1 + $0x38] sm:$0xff]  ;;  %v34_v30 = vld [vmem:[%s779_s3 + $0x8] sm:$0xff] }
   0xa   :  { %522 = vmatprep.subr.mxu0 %v20_v5  ;;  %544 = vmatprep.subr.mxu1 %v20_v5  ;;  %v218_v27 = vld [vmem:[%s777_s2 + $0x38] sm:$0xff]  ;;  %v225_v29 = vld [vmem:[%s778_s4 + $0x30] sm:$0xff]  ;;  %v33_v31 = vld [vmem:[%s779_s3] sm:$0xff] }
   0xb   :  { %523 = vmatpush3.msra.mxu0 %v20_v5  ;;  %524 = vmatprep.mubr.msk.f32.mxu0 %vm81_vm0, %v25_v6  ;;  %v226_v28 = vld [vmem:[%s778_s4 + $0x38] sm:$0xff]  ;;  %v35_v33 = vld [vmem:[%s779_s3 + $0x10] sm:$0xff]  ;;  %v38_v34 = vld [vmem:[%s779_s3 + $0x28] sm:$0xff] }
   0xc   :  { %545 = vmatpush3.msra.mxu1 %v20_v5  ;;  %546 = vmatprep.mubr.msk.f32.mxu1 %vm81_vm0, %v211_v7  ;;  %v36_v32 = vld [vmem:[%s779_s3 + $0x18] sm:$0xff]  ;;  %v37_v35 = vld [vmem:[%s779_s3 + $0x20] sm:$0xff]  ;;  %v39_v37 = vld [vmem:[%s779_s3 + $0x30] sm:$0xff] }
   0xd   :  { %525 = vmatmul.mubr.msk.f32.vlgmr.msra.gmra.mxu0 %vm81_vm0, %v26_v8  ;;  %547 = vmatmul.mubr.msk.f32.vlgmr.msra.gmra.mxu1 %vm81_vm0, %v212_v9  ;;  %v40_v36 = vld [vmem:[%s779_s3 + $0x38] sm:$0xff] }
   0xe   :  { %527 = vmatprep.mubr.msk.f32.mxu0 %vm81_vm0, %v27_v10  ;;  %549 = vmatprep.mubr.msk.f32.mxu1 %vm81_vm0, %v213_v11 }
   0xf   :  { %239 = vperm.xlu1 %560, %v221_v12   ;;  %229 = vperm.xlu0 %559, %v219_v13  }
  0x11   :  { %528 = vmatmul.mubr.msk.f32.gmra.mxu0 %vm81_vm0, %v28_v14  ;;  %550 = vmatmul.mubr.msk.f32.gmra.mxu1 %vm81_vm0, %v214_v15 }
  0x12   :  { %530 = vmatprep.mubr.msk.f32.mxu0 %vm81_vm0, %v29_v16  ;;  %552 = vmatprep.mubr.msk.f32.mxu1 %vm81_vm0, %v215_v17 }
  0x13   :  { %244 = vperm.xlu1 %560, %v222_v18   ;;  %234 = vperm.xlu0 %559, %v220_v19  }
  0x15   :  { %531 = vmatmul.mubr.msk.f32.gmra.mxu0 %vm81_vm0, %v30_v20  ;;  %553 = vmatmul.mubr.msk.f32.gmra.mxu1 %vm81_vm0, %v216_v21 }
  0x16   :  { %533 = vmatprep.mubr.msk.f32.mxu0 %vm81_vm0, %v31_v22  ;;  %555 = vmatprep.mubr.msk.f32.mxu1 %vm81_vm0, %v217_v23 }
  0x17   :  { %254 = vperm.xlu1 %560, %v224_v24   ;;  %249 = vperm.xlu0 %559, %v223_v25  }
  0x19   :  { %534 = vmatmul.mubr.msk.f32.gmra.mxu0 %vm81_vm0, %v32_v26  ;;  %556 = vmatmul.mubr.msk.f32.gmra.mxu1 %vm81_vm0, %v218_v27 }
  0x1b   :  { %264 = vperm.xlu1 %560, %v226_v28   ;;  %259 = vperm.xlu0 %559, %v225_v29  }
  0x1f   :  { %48 = vperm.xlu1 %560, %v34_v30   ;;  %43 = vperm.xlu0 %559, %v33_v31  }
  0x23   :  { %58 = vperm.xlu1 %560, %v36_v32   ;;  %53 = vperm.xlu0 %559, %v35_v33  }
  0x27   :  { %68 = vperm.xlu1 %560, %v38_v34   ;;  %63 = vperm.xlu0 %559, %v37_v35  }
  0x2b   :  { %78 = vperm.xlu1 %560, %v40_v36   ;;  %73 = vperm.xlu0 %559, %v39_v37  }
  0x8a   :  { %v240_v38 = vpop.permute.xlu1 %239  ;;  %v230_v39 = vpop.permute.xlu0 %229 }
  0x8e   :  { %v245_v40 = vpop.permute.xlu1 %244  ;;  %v235_v41 = vpop.permute.xlu0 %234 }
  0x92   :  { %v255_v50 = vpop.permute.xlu1 %254  ;;  %v250_v54 = vpop.permute.xlu0 %249 }
  0x96   :  { %v265_v61 = vpop.permute.xlu1 %264  ;;  %v260_v1 = vpop.permute.xlu0 %259 }
  0x9a   :  { %v49_v18 = vpop.permute.xlu1 %48  ;;  %v44_v21 = vpop.permute.xlu0 %43 }
  0x9e   :  { %v59_v27 = vpop.permute.xlu1 %58  ;;  %v54_v32 = vpop.permute.xlu0 %53 }
  0xcd   :  { %v548_v42 = vpop.f32.mrf.mxu1  ;;  %v526_v5 = vpop.f32.mrf.mxu0 }
  0xce   :  { %v363_v43 = vadd.f32 %v548_v42, %v235_v41  ;;  %v178_v29 = vadd.f32 %v526_v5, %v49_v18 }
  0xcf   :  { %v357_v44 = vpop.f32.mrf.mxu1  ;;  %v172_v10 = vpop.f32.mrf.mxu0 }
  0xd0   :  { %v481_v45 = vmul.f32 -1.442695, %v363_v43  ;;  %v358_v46 = vadd.f32 %v357_v44, %v230_v39  ;;  %v173_v34 = vadd.f32 %v172_v10, %v44_v21  ;;  %v64_v44 = vpop.permute.xlu0 %63 }
  0xd1   :  { %v551_v47 = vpop.f32.mrf.mxu1  ;;  %v529_v15 = vpop.f32.mrf.mxu0 }
  0xd2   :  { %561 = vpow2.f32 %v481_v45  ;;  %v480_v48 = vmul.f32 -1.442695, %v358_v46  ;;  %v373_v49 = vadd.f32 %v551_v47, %v245_v40  ;;  %v69_v40 = vpop.permute.xlu1 %68 }
  0xd3   :  { %v367_v51 = vpop.f32.mrf.mxu1  ;;  %v182_v22 = vpop.f32.mrf.mxu0 }
  0xd4   :  { %563 = vpow2.f32 %v480_v48  ;;  %v483_v52 = vmul.f32 -1.442695, %v373_v49  ;;  %v368_v53 = vadd.f32 %v367_v51, %v240_v38  ;;  %v188_v38 = vadd.f32 %v529_v15, %v59_v27 }
  0xd5   :  { %v554_v55 = vpop.f32.mrf.mxu1  ;;  %v532_v28 = vpop.f32.mrf.mxu0  ;;  %v183_v42 = vadd.f32 %v182_v22, %v54_v32 }
  0xd6   :  { %565 = vpow2.f32 %v483_v52  ;;  %v482_v56 = vmul.f32 -1.442695, %v368_v53  ;;  %v383_v57 = vadd.f32 %v554_v55, %v255_v50  ;;  %v198_v47 = vadd.f32 %v532_v28, %v69_v40  ;;  %v79_v52 = vpop.permute.xlu1 %78 }
  0xd7   :  { %v377_v58 = vpop.f32.mrf.mxu1  ;;  %v192_v36 = vpop.f32.mrf.mxu0 }
  0xd8   :  { %567 = vpow2.f32 %v482_v56  ;;  %v485_v59 = vmul.f32 -1.442695, %v383_v57  ;;  %v378_v60 = vadd.f32 %v377_v58, %v250_v54  ;;  %v193_v50 = vadd.f32 %v192_v36, %v64_v44  ;;  %v74_v57 = vpop.permute.xlu0 %73 }
  0xd9   :  { %v557_v62 = vpop.f32.mrf.mxu1  ;;  %v535_v45 = vpop.f32.mrf.mxu0 }
  0xda   :  { %569 = vpow2.f32 %v485_v59  ;;  %v484_v63 = vmul.f32 -1.442695, %v378_v60  ;;  %v393_v0 = vadd.f32 %v557_v62, %v265_v61  ;;  %v208_v55 = vadd.f32 %v535_v45, %v79_v52 }
  0xdb   :  { %v387_v2 = vpop.f32.mrf.mxu1  ;;  %v202_v53 = vpop.f32.mrf.mxu0 }
  0xdc   :  { %571 = vpow2.f32 %v484_v63  ;;  %v487_v3 = vmul.f32 -1.442695, %v393_v0  ;;  %v388_v4 = vadd.f32 %v387_v2, %v260_v1  ;;  %v203_v59 = vadd.f32 %v202_v53, %v74_v57 }
  0xde   :  { %573 = vpow2.f32 %v487_v3  ;;  %v486_v6 = vmul.f32 -1.442695, %v388_v4 }
  0xdf   :  { %v562_v7 = vpop.eup %561 }
  0xe0   :  { %v421_v8 = vadd.f32 1.0, %v562_v7  ;;  %575 = vpow2.f32 %v486_v6 }
  0xe1   :  { %v564_v9 = vpop.eup %563 }
  0xe2   :  { %577 = vrcp.f32 %v421_v8  ;;  %v420_v11 = vadd.f32 1.0, %v564_v9 }
  0xe3   :  { %v566_v12 = vpop.eup %565 }
  0xe4   :  { %579 = vrcp.f32 %v420_v11  ;;  %v423_v13 = vadd.f32 1.0, %v566_v12 }
  0xe5   :  { %v568_v14 = vpop.eup %567 }
  0xe6   :  { %581 = vrcp.f32 %v423_v13  ;;  %v422_v16 = vadd.f32 1.0, %v568_v14 }
  0xe7   :  { %v570_v17 = vpop.eup %569 }
  0xe8   :  { %583 = vrcp.f32 %v422_v16  ;;  %v425_v19 = vadd.f32 1.0, %v570_v17 }
  0xe9   :  { %v572_v20 = vpop.eup %571 }
  0xea   :  { %585 = vrcp.f32 %v425_v19  ;;  %v424_v23 = vadd.f32 1.0, %v572_v20 }
  0xeb   :  { %v574_v24 = vpop.eup %573 }
  0xec   :  { %587 = vrcp.f32 %v424_v23  ;;  %v427_v25 = vadd.f32 1.0, %v574_v24 }
  0xed   :  { %v576_v26 = vpop.eup %575 }
  0xee   :  { %589 = vrcp.f32 %v427_v25  ;;  %v426_v30 = vadd.f32 1.0, %v576_v26 }
  0xef   :  { %v578_v31 = vpop.eup %577 }
  0xf0   :  { %v445_v33 = vmul.f32 %v578_v31, %v178_v29  ;;  %591 = vrcp.f32 %v426_v30 }
  0xf1   :  { %v580_v35 = vpop.eup %579 }
  0xf2   :  { %453 = vst [vmem:[%s780_s5 + $0x8] sm:$0xff] %v445_v33  ;;  %v444_v37 = vmul.f32 %v580_v35, %v173_v34 }
  0xf3   :  { %v582_v39 = vpop.eup %581 }
  0xf4   :  { %452 = vst [vmem:[%s780_s5] sm:$0xff] %v444_v37  ;;  %v447_v41 = vmul.f32 %v582_v39, %v188_v38 }
  0xf5   :  { %v584_v43 = vpop.eup %583 }
  0xf6   :  { %455 = vst [vmem:[%s780_s5 + $0x18] sm:$0xff] %v447_v41  ;;  %v446_v46 = vmul.f32 %v584_v43, %v183_v42 }
  0xf7   :  { %v586_v48 = vpop.eup %585 }
  0xf8   :  { %454 = vst [vmem:[%s780_s5 + $0x10] sm:$0xff] %v446_v46  ;;  %v449_v49 = vmul.f32 %v586_v48, %v198_v47 }
  0xf9   :  { %v588_v51 = vpop.eup %587 }
  0xfa   :  { %457 = vst [vmem:[%s780_s5 + $0x28] sm:$0xff] %v449_v49  ;;  %v448_v54 = vmul.f32 %v588_v51, %v193_v50 }
  0xfb   :  { %v590_v56 = vpop.eup %589 }
  0xfc   :  { %456 = vst [vmem:[%s780_s5 + $0x20] sm:$0xff] %v448_v54  ;;  %v451_v58 = vmul.f32 %v590_v56, %v208_v55 }
  0xfd   :  { %v592_v60 = vpop.eup %591 }
  0xfe   :  { %459 = vst [vmem:[%s780_s5 + $0x38] sm:$0xff] %v451_v58  ;;  %v450_v61 = vmul.f32 %v592_v60, %v203_v59 }
 0x100   :  { %458 = vst [vmem:[%s780_s5 + $0x30] sm:$0xff] %v450_v61 }

</bundles_post_ra>
